<compile_context>
chip_gen: v7x
topology: tpu7x:2x2x1
jax: 0.10.0
libtpu: 0.0.40
codegen_flags: <defaults>
</compile_context>

<pallas_src>
import functools

import jax
import jax.numpy as jnp
from jax import lax
from jax.experimental import pallas as pl
from jax.experimental.pallas import tpu as pltpu


def _mi_kernel(rgb_ref, point_ref, eps_r_ref, eps_p_ref,
               w_r_ref, w_p_ref, b_r_ref, b_p_ref,
               z_rgb_ref, z_point_ref, loss_ref,
               *, hidden, n_batch, H, W, hw_valid, masked):
    f32 = jnp.float32
    h = hidden

    # ---- torch_L2normalize over channels (sublane reduce), via rsqrt --------
    def l2n(x):
        return x * lax.rsqrt(jnp.sum(x * x, axis=0, keepdims=True) + 1e-6)

    rgb = l2n(rgb_ref[...])            # (Cin, T)
    point = l2n(point_ref[...])        # (Cin, T)

    # ---- fused 1x1 convs: one (2h, Cin) @ (Cin, T) matmul per modality ------
    def head(x, w, b):                 # -> (2h, T) slab laid out [mu ; logvar]
        return jnp.tanh(jnp.dot(w, x, preferred_element_type=f32) + b)

    slab_r = head(rgb, w_r_ref[...], b_r_ref[...])
    slab_p = head(point, w_p_ref[...], b_p_ref[...])
    mu_r, lv_r = slab_r[:h], slab_r[h:]
    mu_p, lv_p = slab_p[:h], slab_p[h:]

    # ---- reparametrize; z stores are lane-dense ------------------------------
    std_r = jnp.exp(0.5 * lv_r)
    std_p = jnp.exp(0.5 * lv_p)
    z_r = eps_r_ref[...] * std_r + mu_r
    z_p = eps_p_ref[...] * std_p + mu_p
    z_rgb_ref[...] = z_r
    z_point_ref[...] = z_p

    # ---- bidirectional BCE (targets are .detach()'d -> same forward values) -
    p_r = jax.nn.sigmoid(z_r)
    p_p = jax.nn.sigmoid(z_p)
    log_pr = jnp.log(p_r)
    log_pp = jnp.log(p_p)
    # log(1 - sigmoid(z)) == log(sigmoid(z)) - z  (exact; saves one EUP log and
    # avoids the 1-p cancellation).  torch's BCE clamps both logs at -100.
    bce = (-(p_p * jnp.maximum(log_pr, -100.0)
             + (1.0 - p_p) * jnp.maximum(log_pr - z_r, -100.0))
           - (p_r * jnp.maximum(log_pp, -100.0)
              + (1.0 - p_r) * jnp.maximum(log_pp - z_p, -100.0)))

    # ---- symmetric KL; the log(s2/s1) terms cancel analytically -------------
    sr2 = std_r * std_r
    sp2 = std_p * std_p
    var_r = sr2 * sr2                  # exp(2*logvar) == scale^2
    var_p = sp2 * sp2
    ivar_r = jnp.exp(-2.0 * lv_r)      # exact 1/var via one EUP exp (no divide)
    ivar_p = jnp.exp(-2.0 * lv_p)
    d = mu_r - mu_p
    d2 = d * d                         # shared by both KL directions
    kl = 0.5 * ((var_r + d2) * ivar_p + (var_p + d2) * ivar_r) - 1.0

    # ---- one fused, pre-scaled per-tile reduction ----------------------------
    c_bce = 1.0 / float(n_batch * hidden * H * W * H * W)   # BCE mean, then /(H*W)
    c_kl = 1.0 / float(n_batch * hidden * H * H * W)        # KL mean (event=W), /(H*W)
    combined = bce * c_bce - kl * c_kl
    if masked:                          # only traced when H*W was lane-padded
        t = combined.shape[-1]
        col = lax.broadcasted_iota(jnp.int32, (1, t), 1) + pl.program_id(1) * t
        combined = jnp.where(col < hw_valid, combined, 0.0)

    loss_ref[...] = jnp.broadcast_to(jnp.sum(combined, keepdims=True),
                                     loss_ref.shape)


def _pick_tile(hw_pad, cap_px):
    """Largest multiple of 128 that divides hw_pad and is <= cap_px."""
    t = max(128, min((cap_px // 128) * 128, hw_pad))
    while hw_pad % t:
        t -= 128
    return t


def mutual_info_reg_2d(rgb_feat, point_feat, params, eps_rgb, eps_point, *,
                       tile_px=2048):
    """rgb_feat / point_feat: (N, Cin, H, W) f32; eps_*: (N, hidden, H, W) f32."""
    N, Cin, H, W = rgb_feat.shape
    hidden = params["w_rgb_mu"].shape[1]
    two_h = 2 * hidden
    HW = H * W
    HW_pad = ((HW + 127) // 128) * 128       # == HW whenever H*W % 128 == 0
    pad = HW_pad - HW
    tile = _pick_tile(HW_pad, tile_px)
    num_j = HW_pad // tile

    # Free relayout: NCHW -> (N, C, H*W); channels land on sublanes, pixels on
    # lanes.  No transposes, no eps concat; padding only for ragged H*W.
    def to3(x):
        x3 = x.reshape(x.shape[0], x.shape[1], HW)
        return jnp.pad(x3, ((0, 0), (0, 0), (0, pad))) if pad else x3

    rgb3, point3 = to3(rgb_feat), to3(point_feat)
    eps_r3, eps_p3 = to3(eps_rgb), to3(eps_point)

    # Per-modality fused [mu ; logvar] heads: (2h, Cin) weight, (2h, 1) bias.
    w_rgb = jnp.concatenate([params["w_rgb_mu"].T, params["w_rgb_logvar"].T], axis=0)
    w_point = jnp.concatenate([params["w_point_mu"].T, params["w_point_logvar"].T], axis=0)
    b_rgb = jnp.concatenate([params["b_rgb_mu"], params["b_rgb_logvar"]],
                            axis=1).reshape(two_h, 1)
    b_point = jnp.concatenate([params["b_point_mu"], params["b_point_logvar"]],
                              axis=1).reshape(two_h, 1)

    kernel = functools.partial(_mi_kernel, hidden=hidden, n_batch=N, H=H, W=W,
                               hw_valid=HW, masked=(pad != 0))

    px_spec = lambda c: pl.BlockSpec((None, c, tile), lambda n, j: (n, 0, j))
    rep_spec = lambda s: pl.BlockSpec(s, lambda n, j: (0, 0))

    # advisory cost estimate
    px_total = N * HW_pad
    flops = px_total * (2 * two_h * Cin * 2 + 36 * two_h)
    transc = px_total * (6 * two_h + 2)
    bytes_acc = 4 * (px_total * (2 * Cin + 4 * hidden)
                     + N * num_j * 8 * 128 + 2 * two_h * (Cin + 1))

    z_rgb3, z_point3, loss_parts = pl.pallas_call(
        kernel,
        grid=(N, num_j),
        in_specs=[
            px_spec(Cin),                 # rgb       (N, Cin, HW_pad)
            px_spec(Cin),                 # point
            px_spec(hidden),              # eps_rgb   (N, hidden, HW_pad)
            px_spec(hidden),              # eps_point
            rep_spec((two_h, Cin)),       # w_rgb     (VMEM-resident)
            rep_spec((two_h, Cin)),       # w_point
            rep_spec((two_h, 1)),         # b_rgb
            rep_spec((two_h, 1)),         # b_point
        ],
        out_specs=(
            pl.BlockSpec((None, hidden, tile), lambda n, j: (n, 0, j)),
            pl.BlockSpec((None, hidden, tile), lambda n, j: (n, 0, j)),
            pl.BlockSpec((8, 128), lambda n, j: (n * num_j + j, 0)),
        ),
        out_shape=(
            jax.ShapeDtypeStruct((N, hidden, HW_pad), jnp.float32),
            jax.ShapeDtypeStruct((N, hidden, HW_pad), jnp.float32),
            jax.ShapeDtypeStruct((N * num_j * 8, 128), jnp.float32),
        ),
        compiler_params=pltpu.CompilerParams(
            dimension_semantics=("parallel", "parallel"),
            vmem_limit_bytes=32 * 1024 * 1024),
        cost_estimate=pl.CostEstimate(
            flops=int(flops), transcendentals=int(transc),
            bytes_accessed=int(bytes_acc)),
    )(rgb3, point3, eps_r3, eps_p3, w_rgb, w_point, b_rgb, b_point)

    loss = jnp.sum(loss_parts.reshape(N * num_j, 8, 128)[:, 0, 0])
    if pad:
        z_rgb3 = z_rgb3[:, :, :HW]
        z_point3 = z_point3[:, :, :HW]
    z_rgb = z_rgb3.reshape(N, hidden, H, W)
    z_point = z_point3.reshape(N, hidden, H, W)
    return loss, z_rgb, z_point


def _reference(rgb_feat, point_feat, params, eps_rgb, eps_point):
    """Pure-JAX reference mirroring the PyTorch forward."""
    N, _, H, W = rgb_feat.shape
    hidden = params["w_rgb_mu"].shape[1]

    def l2n(x):
        return x / jnp.sqrt(jnp.sum(x * x, axis=1, keepdims=True) + 1e-6)

    def conv(x, w, b):
        return jnp.einsum("nchw,cd->ndhw", x, w) + b.reshape(1, -1, 1, 1)

    rgb = l2n(rgb_feat)
    point = l2n(point_feat)
    mu_r = jnp.tanh(conv(rgb, params["w_rgb_mu"], params["b_rgb_mu"]))
    lv_r = jnp.tanh(conv(rgb, params["w_rgb_logvar"], params["b_rgb_logvar"]))
    mu_p = jnp.tanh(conv(point, params["w_point_mu"], params["b_point_mu"]))
    lv_p = jnp.tanh(conv(point, params["w_point_logvar"], params["b_point_logvar"]))
    z_r = eps_rgb * jnp.exp(0.5 * lv_r) + mu_r
    z_p = eps_point * jnp.exp(0.5 * lv_p) + mu_p
    pr, pp = jax.nn.sigmoid(z_r), jax.nn.sigmoid(z_p)

    def bce(p, t):
        return -jnp.mean(t * jnp.maximum(jnp.log(p), -100.0)
                         + (1 - t) * jnp.maximum(jnp.log(1 - p), -100.0))

    def klsum(m1, s1, m2, s2):
        return jnp.sum(jnp.log(s2 / s1) + (s1 ** 2 + (m1 - m2) ** 2) / (2 * s2 ** 2) - 0.5)

    s_r, s_p = jnp.exp(lv_r), jnp.exp(lv_p)
    n_kl = N * hidden * H
    kld = (klsum(mu_r, s_r, mu_p, s_p) + klsum(mu_p, s_p, mu_r, s_r)) / n_kl
    loss = (bce(pr, pp) + bce(pp, pr) - kld) / (H * W)
    return loss, z_r, z_p


if __name__ == "__main__":
    N, Cin, H, W, hidden = 2, 4, 16, 16, 32
    key = jax.random.PRNGKey(0)
    ks = jax.random.split(key, 12)

    rgb_feat = jax.random.normal(ks[0], (N, Cin, H, W), jnp.float32)
    point_feat = jax.random.normal(ks[1], (N, Cin, H, W), jnp.float32)
    # eps ~ N(0,1) for reparametrization (torch uses cuda normal_(); we pass it in).
    eps_rgb = jax.random.normal(ks[2], (N, hidden, H, W), jnp.float32)
    eps_point = jax.random.normal(ks[3], (N, hidden, H, W), jnp.float32)

    scale = 1.0 / (Cin ** 0.5)
    params = {
        "w_rgb_mu": jax.random.normal(ks[4], (Cin, hidden), jnp.float32) * scale,
        "b_rgb_mu": jax.random.normal(ks[5], (1, hidden), jnp.float32) * 0.01,
        "w_rgb_logvar": jax.random.normal(ks[6], (Cin, hidden), jnp.float32) * scale,
        "b_rgb_logvar": jax.random.normal(ks[7], (1, hidden), jnp.float32) * 0.01,
        "w_point_mu": jax.random.normal(ks[8], (Cin, hidden), jnp.float32) * scale,
        "b_point_mu": jax.random.normal(ks[9], (1, hidden), jnp.float32) * 0.01,
        "w_point_logvar": jax.random.normal(ks[10], (Cin, hidden), jnp.float32) * scale,
        "b_point_logvar": jax.random.normal(ks[11], (1, hidden), jnp.float32) * 0.01,
    }

    # tile_px=128 -> grid (2, 2) at this toy size (exercises the pipelined grid);
    # in production the default tile (2048 px, or larger on v7x) is used.
    run = jax.jit(functools.partial(mutual_info_reg_2d, tile_px=128))
    loss, z_rgb, z_point = run(rgb_feat, point_feat, params, eps_rgb, eps_point)
    jax.block_until_ready((loss, z_rgb, z_point))

    ref_loss, ref_zr, ref_zp = _reference(rgb_feat, point_feat, params, eps_rgb, eps_point)
    assert jnp.allclose(z_rgb, ref_zr, atol=1e-3, rtol=1e-3)
    assert jnp.allclose(z_point, ref_zp, atol=1e-3, rtol=1e-3)
    assert jnp.allclose(loss, ref_loss, atol=1e-4, rtol=1e-3)

    print("KERNEL_OK")
</pallas_src>

<mosaic_0001>
module attributes {stable_mosaic.version = 11 : i64} {
  func.func @_mi_kernel(%arg0: i32, %arg1: i32, %arg2: memref<1x4x128xf32, #tpu.memory_space<vmem>>, %arg3: memref<1x4x128xf32, #tpu.memory_space<vmem>>, %arg4: memref<1x32x128xf32, #tpu.memory_space<vmem>>, %arg5: memref<1x32x128xf32, #tpu.memory_space<vmem>>, %arg6: memref<64x4xf32, #tpu.memory_space<vmem>>, %arg7: memref<64x4xf32, #tpu.memory_space<vmem>>, %arg8: memref<64x1xf32, #tpu.memory_space<vmem>>, %arg9: memref<64x1xf32, #tpu.memory_space<vmem>>, %arg10: memref<1x32x128xf32, #tpu.memory_space<vmem>>, %arg11: memref<1x32x128xf32, #tpu.memory_space<vmem>>, %arg12: memref<8x128xf32, #tpu.memory_space<vmem>>) attributes {dimension_semantics = [#tpu.dimension_semantics<parallel>, #tpu.dimension_semantics<parallel>], iteration_bounds = array<i64: 2, 2>, scalar_prefetch = 0 : i64, scratch_operands = 0 : i64, tpu.core_type = #tpu.core_type<tc>, window_params = [{transform_indices = @transform_0, window_bounds = array<i64: 1, 4, 128>}, {transform_indices = @transform_1, window_bounds = array<i64: 1, 4, 128>}, {transform_indices = @transform_2, window_bounds = array<i64: 1, 32, 128>}, {transform_indices = @transform_3, window_bounds = array<i64: 1, 32, 128>}, {pipeline_mode = #tpu.pipeline_mode<synchronous>, transform_indices = @transform_4, window_bounds = array<i64: 64, 4>}, {pipeline_mode = #tpu.pipeline_mode<synchronous>, transform_indices = @transform_5, window_bounds = array<i64: 64, 4>}, {pipeline_mode = #tpu.pipeline_mode<synchronous>, transform_indices = @transform_6, window_bounds = array<i64: 64, 1>}, {pipeline_mode = #tpu.pipeline_mode<synchronous>, transform_indices = @transform_7, window_bounds = array<i64: 64, 1>}, {transform_indices = @transform_8, window_bounds = array<i64: 1, 32, 128>}, {transform_indices = @transform_9, window_bounds = array<i64: 1, 32, 128>}, {transform_indices = @transform_10, window_bounds = array<i64: 8, 128>}]} {
    %c0 = arith.constant 0 : index
    %c0_0 = arith.constant 0 : index
    %c0_1 = arith.constant 0 : index
    %0 = vector.load %arg2[%c0, %c0_0, %c0_1] : memref<1x4x128xf32, #tpu.memory_space<vmem>>, vector<1x4x128xf32>
    %1 = vector.shape_cast %0 : vector<1x4x128xf32> to vector<4x128xf32>
    %2 = arith.mulf %1, %1 : vector<4x128xf32>
    %cst = arith.constant dense<0.000000e+00> : vector<128xf32>
    %3 = vector.multi_reduction <add>, %2, %cst [0] : vector<4x128xf32> to vector<128xf32>
    %4 = vector.shape_cast %3 : vector<128xf32> to vector<1x128xf32>
    %cst_2 = arith.constant 9.99999997E-7 : f32
    %5 = vector.broadcast %cst_2 : f32 to vector<1x128xf32>
    %6 = arith.addf %4, %5 : vector<1x128xf32>
    %7 = math.rsqrt %6 : vector<1x128xf32>
    %8 = vector.broadcast %7 : vector<1x128xf32> to vector<4x128xf32>
    %9 = arith.mulf %1, %8 : vector<4x128xf32>
    %c0_3 = arith.constant 0 : index
    %c0_4 = arith.constant 0 : index
    %c0_5 = arith.constant 0 : index
    %10 = vector.load %arg3[%c0_3, %c0_4, %c0_5] : memref<1x4x128xf32, #tpu.memory_space<vmem>>, vector<1x4x128xf32>
    %11 = vector.shape_cast %10 : vector<1x4x128xf32> to vector<4x128xf32>
    %12 = arith.mulf %11, %11 : vector<4x128xf32>
    %cst_6 = arith.constant dense<0.000000e+00> : vector<128xf32>
    %13 = vector.multi_reduction <add>, %12, %cst_6 [0] : vector<4x128xf32> to vector<128xf32>
    %14 = vector.shape_cast %13 : vector<128xf32> to vector<1x128xf32>
    %cst_7 = arith.constant 9.99999997E-7 : f32
    %15 = vector.broadcast %cst_7 : f32 to vector<1x128xf32>
    %16 = arith.addf %14, %15 : vector<1x128xf32>
    %17 = math.rsqrt %16 : vector<1x128xf32>
    %18 = vector.broadcast %17 : vector<1x128xf32> to vector<4x128xf32>
    %19 = arith.mulf %11, %18 : vector<4x128xf32>
    %c0_8 = arith.constant 0 : index
    %c0_9 = arith.constant 0 : index
    %20 = vector.load %arg6[%c0_8, %c0_9] : memref<64x4xf32, #tpu.memory_space<vmem>>, vector<64x4xf32>
    %c0_10 = arith.constant 0 : index
    %c0_11 = arith.constant 0 : index
    %21 = vector.load %arg8[%c0_10, %c0_11] : memref<64x1xf32, #tpu.memory_space<vmem>>, vector<64x1xf32>
    %cst_12 = arith.constant dense<0.000000e+00> : vector<64x128xf32>
    %22 = tpu.matmul %20, %9, %cst_12 {dimension_numbers = #tpu.dot_dimension_numbers<[1], [0], [0], [1], [0, 0, 1, 1], [], []>} : vector<64x4xf32>, vector<4x128xf32>, vector<64x128xf32> -> vector<64x128xf32>
    %23 = vector.broadcast %21 : vector<64x1xf32> to vector<64x128xf32>
    %24 = arith.addf %22, %23 : vector<64x128xf32>
    %25 = math.tanh %24 : vector<64x128xf32>
    %c0_13 = arith.constant 0 : index
    %c0_14 = arith.constant 0 : index
    %26 = vector.load %arg7[%c0_13, %c0_14] : memref<64x4xf32, #tpu.memory_space<vmem>>, vector<64x4xf32>
    %c0_15 = arith.constant 0 : index
    %c0_16 = arith.constant 0 : index
    %27 = vector.load %arg9[%c0_15, %c0_16] : memref<64x1xf32, #tpu.memory_space<vmem>>, vector<64x1xf32>
    %cst_17 = arith.constant dense<0.000000e+00> : vector<64x128xf32>
    %28 = tpu.matmul %26, %19, %cst_17 {dimension_numbers = #tpu.dot_dimension_numbers<[1], [0], [0], [1], [0, 0, 1, 1], [], []>} : vector<64x4xf32>, vector<4x128xf32>, vector<64x128xf32> -> vector<64x128xf32>
    %29 = vector.broadcast %27 : vector<64x1xf32> to vector<64x128xf32>
    %30 = arith.addf %28, %29 : vector<64x128xf32>
    %31 = math.tanh %30 : vector<64x128xf32>
    %32 = vector.extract_strided_slice %25 {offsets = [0, 0], sizes = [32, 128], strides = [1, 1]} : vector<64x128xf32> to vector<32x128xf32>
    %33 = vector.extract_strided_slice %25 {offsets = [32, 0], sizes = [32, 128], strides = [1, 1]} : vector<64x128xf32> to vector<32x128xf32>
    %34 = vector.extract_strided_slice %31 {offsets = [0, 0], sizes = [32, 128], strides = [1, 1]} : vector<64x128xf32> to vector<32x128xf32>
    %35 = vector.extract_strided_slice %31 {offsets = [32, 0], sizes = [32, 128], strides = [1, 1]} : vector<64x128xf32> to vector<32x128xf32>
    %cst_18 = arith.constant 5.000000e-01 : f32
    %36 = vector.broadcast %cst_18 : f32 to vector<32x128xf32>
    %37 = arith.mulf %36, %33 : vector<32x128xf32>
    %38 = math.exp %37 : vector<32x128xf32>
    %cst_19 = arith.constant 5.000000e-01 : f32
    %39 = vector.broadcast %cst_19 : f32 to vector<32x128xf32>
    %40 = arith.mulf %39, %35 : vector<32x128xf32>
    %41 = math.exp %40 : vector<32x128xf32>
    %c0_20 = arith.constant 0 : index
    %c0_21 = arith.constant 0 : index
    %c0_22 = arith.constant 0 : index
    %42 = vector.load %arg4[%c0_20, %c0_21, %c0_22] : memref<1x32x128xf32, #tpu.memory_space<vmem>>, vector<1x32x128xf32>
    %43 = vector.shape_cast %42 : vector<1x32x128xf32> to vector<32x128xf32>
    %44 = arith.mulf %43, %38 : vector<32x128xf32>
    %45 = arith.addf %44, %32 : vector<32x128xf32>
    %c0_23 = arith.constant 0 : index
    %c0_24 = arith.constant 0 : index
    %c0_25 = arith.constant 0 : index
    %46 = vector.load %arg5[%c0_23, %c0_24, %c0_25] : memref<1x32x128xf32, #tpu.memory_space<vmem>>, vector<1x32x128xf32>
    %47 = vector.shape_cast %46 : vector<1x32x128xf32> to vector<32x128xf32>
    %48 = arith.mulf %47, %41 : vector<32x128xf32>
    %49 = arith.addf %48, %34 : vector<32x128xf32>
    %c0_26 = arith.constant 0 : index
    %c0_27 = arith.constant 0 : index
    %c0_28 = arith.constant 0 : index
    %50 = vector.load %arg10[%c0_26, %c0_27, %c0_28] : memref<1x32x128xf32, #tpu.memory_space<vmem>>, vector<1x32x128xf32>
    %51 = vector.shape_cast %50 : vector<1x32x128xf32> to vector<32x128xf32>
    %52 = vector.shape_cast %45 : vector<32x128xf32> to vector<1x32x128xf32>
    tpu.vector_store %arg10[%c0_26, %c0_27, %c0_28], %52 {strides = array<i32>} : memref<1x32x128xf32, #tpu.memory_space<vmem>>, vector<1x32x128xf32>,
    %c0_29 = arith.constant 0 : index
    %c0_30 = arith.constant 0 : index
    %c0_31 = arith.constant 0 : index
    %53 = vector.load %arg11[%c0_29, %c0_30, %c0_31] : memref<1x32x128xf32, #tpu.memory_space<vmem>>, vector<1x32x128xf32>
    %54 = vector.shape_cast %53 : vector<1x32x128xf32> to vector<32x128xf32>
    %55 = vector.shape_cast %49 : vector<32x128xf32> to vector<1x32x128xf32>
    tpu.vector_store %arg11[%c0_29, %c0_30, %c0_31], %55 {strides = array<i32>} : memref<1x32x128xf32, #tpu.memory_space<vmem>>, vector<1x32x128xf32>,
    %56 = arith.negf %45 : vector<32x128xf32>
    %57 = math.exp %56 : vector<32x128xf32>
    %cst_32 = arith.constant 1.000000e+00 : f32
    %58 = vector.broadcast %cst_32 : f32 to vector<32x128xf32>
    %59 = arith.addf %58, %57 : vector<32x128xf32>
    %60 = arith.divf %58, %59 : vector<32x128xf32>
    %61 = arith.negf %49 : vector<32x128xf32>
    %62 = math.exp %61 : vector<32x128xf32>
    %cst_33 = arith.constant 1.000000e+00 : f32
    %63 = vector.broadcast %cst_33 : f32 to vector<32x128xf32>
    %64 = arith.addf %63, %62 : vector<32x128xf32>
    %65 = arith.divf %63, %64 : vector<32x128xf32>
    %66 = math.log %60 : vector<32x128xf32>
    %67 = math.log %65 : vector<32x128xf32>
    %cst_34 = arith.constant -1.000000e+02 : f32
    %68 = vector.broadcast %cst_34 : f32 to vector<32x128xf32>
    %69 = arith.maximumf %66, %68 : vector<32x128xf32>
    %70 = arith.mulf %65, %69 : vector<32x128xf32>
    %cst_35 = arith.constant 1.000000e+00 : f32
    %71 = vector.broadcast %cst_35 : f32 to vector<32x128xf32>
    %72 = arith.subf %71, %65 : vector<32x128xf32>
    %73 = arith.subf %66, %45 : vector<32x128xf32>
    %cst_36 = arith.constant -1.000000e+02 : f32
    %74 = vector.broadcast %cst_36 : f32 to vector<32x128xf32>
    %75 = arith.maximumf %73, %74 : vector<32x128xf32>
    %76 = arith.mulf %72, %75 : vector<32x128xf32>
    %77 = arith.addf %70, %76 : vector<32x128xf32>
    %cst_37 = arith.constant 0.000000e+00 : f32
    %78 = vector.broadcast %cst_37 : f32 to vector<32x128xf32>
    %79 = arith.subf %78, %77 : vector<32x128xf32>
    %cst_38 = arith.constant -1.000000e+02 : f32
    %80 = vector.broadcast %cst_38 : f32 to vector<32x128xf32>
    %81 = arith.maximumf %67, %80 : vector<32x128xf32>
    %82 = arith.mulf %60, %81 : vector<32x128xf32>
    %cst_39 = arith.constant 1.000000e+00 : f32
    %83 = vector.broadcast %cst_39 : f32 to vector<32x128xf32>
    %84 = arith.subf %83, %60 : vector<32x128xf32>
    %85 = arith.subf %67, %49 : vector<32x128xf32>
    %cst_40 = arith.constant -1.000000e+02 : f32
    %86 = vector.broadcast %cst_40 : f32 to vector<32x128xf32>
    %87 = arith.maximumf %85, %86 : vector<32x128xf32>
    %88 = arith.mulf %84, %87 : vector<32x128xf32>
    %89 = arith.addf %82, %88 : vector<32x128xf32>
    %90 = arith.subf %79, %89 : vector<32x128xf32>
    %91 = arith.mulf %38, %38 : vector<32x128xf32>
    %92 = arith.mulf %41, %41 : vector<32x128xf32>
    %93 = arith.mulf %91, %91 : vector<32x128xf32>
    %94 = arith.mulf %92, %92 : vector<32x128xf32>
    %cst_41 = arith.constant -2.000000e+00 : f32
    %95 = vector.broadcast %cst_41 : f32 to vector<32x128xf32>
    %96 = arith.mulf %95, %33 : vector<32x128xf32>
    %97 = math.exp %96 : vector<32x128xf32>
    %cst_42 = arith.constant -2.000000e+00 : f32
    %98 = vector.broadcast %cst_42 : f32 to vector<32x128xf32>
    %99 = arith.mulf %98, %35 : vector<32x128xf32>
    %100 = math.exp %99 : vector<32x128xf32>
    %101 = arith.subf %32, %34 : vector<32x128xf32>
    %102 = arith.mulf %101, %101 : vector<32x128xf32>
    %103 = arith.addf %93, %102 : vector<32x128xf32>
    %104 = arith.mulf %103, %100 : vector<32x128xf32>
    %105 = arith.addf %94, %102 : vector<32x128xf32>
    %106 = arith.mulf %105, %97 : vector<32x128xf32>
    %107 = arith.addf %104, %106 : vector<32x128xf32>
    %cst_43 = arith.constant 5.000000e-01 : f32
    %108 = vector.broadcast %cst_43 : f32 to vector<32x128xf32>
    %109 = arith.mulf %108, %107 : vector<32x128xf32>
    %cst_44 = arith.constant 1.000000e+00 : f32
    %110 = vector.broadcast %cst_44 : f32 to vector<32x128xf32>
    %111 = arith.subf %109, %110 : vector<32x128xf32>
    %cst_45 = arith.constant 2.38418579E-7 : f32
    %112 = vector.broadcast %cst_45 : f32 to vector<32x128xf32>
    %113 = arith.mulf %90, %112 : vector<32x128xf32>
    %cst_46 = arith.constant 3.81469727E-6 : f32
    %114 = vector.broadcast %cst_46 : f32 to vector<32x128xf32>
    %115 = arith.mulf %111, %114 : vector<32x128xf32>
    %116 = arith.subf %113, %115 : vector<32x128xf32>
    %117 = vector.shape_cast %116 : vector<32x128xf32> to vector<1x32x128xf32>
    %cst_47 = arith.constant dense<0.000000e+00> : vector<1xf32>
    %118 = vector.multi_reduction <add>, %117, %cst_47 [1, 2] : vector<1x32x128xf32> to vector<1xf32>
    %119 = vector.shape_cast %118 : vector<1xf32> to vector<1x1x1xf32>
    %120 = vector.extract %119[0, 0, 0] : f32 from vector<1x1x1xf32>
    %121 = vector.broadcast %120 : f32 to vector<1x1xf32>
    %122 = vector.shape_cast %121 : vector<1x1xf32> to vector<1x1xf32>
    %123 = vector.broadcast %122 : vector<1x1xf32> to vector<8x128xf32>
    %c0_48 = arith.constant 0 : index
    %c0_49 = arith.constant 0 : index
    %124 = vector.load %arg12[%c0_48, %c0_49] : memref<8x128xf32, #tpu.memory_space<vmem>>, vector<8x128xf32>
    tpu.vector_store %arg12[%c0_48, %c0_49], %123 {strides = array<i32>} : memref<8x128xf32, #tpu.memory_space<vmem>>, vector<8x128xf32>,
    return
  }
  func.func @transform_0(%arg0: i32, %arg1: i32) -> (i32, i32, i32) {
    %c0_i32 = arith.constant 0 : i32
    %c0_i32_0 = arith.constant 0 : i32
    return %arg0, %c0_i32, %arg1 : i32, i32, i32
  }
  func.func @transform_1(%arg0: i32, %arg1: i32) -> (i32, i32, i32) {
    %c0_i32 = arith.constant 0 : i32
    %c0_i32_0 = arith.constant 0 : i32
    return %arg0, %c0_i32, %arg1 : i32, i32, i32
  }
  func.func @transform_2(%arg0: i32, %arg1: i32) -> (i32, i32, i32) {
    %c0_i32 = arith.constant 0 : i32
    %c0_i32_0 = arith.constant 0 : i32
    return %arg0, %c0_i32, %arg1 : i32, i32, i32
  }
  func.func @transform_3(%arg0: i32, %arg1: i32) -> (i32, i32, i32) {
    %c0_i32 = arith.constant 0 : i32
    %c0_i32_0 = arith.constant 0 : i32
    return %arg0, %c0_i32, %arg1 : i32, i32, i32
  }
  func.func @transform_4(%arg0: i32, %arg1: i32) -> (i32, i32) {
    %c0_i32 = arith.constant 0 : i32
    %c0_i32_0 = arith.constant 0 : i32
    %c0_i32_1 = arith.constant 0 : i32
    return %c0_i32, %c0_i32_0 : i32, i32
  }
  func.func @transform_5(%arg0: i32, %arg1: i32) -> (i32, i32) {
    %c0_i32 = arith.constant 0 : i32
    %c0_i32_0 = arith.constant 0 : i32
    %c0_i32_1 = arith.constant 0 : i32
    return %c0_i32, %c0_i32_0 : i32, i32
  }
  func.func @transform_6(%arg0: i32, %arg1: i32) -> (i32, i32) {
    %c0_i32 = arith.constant 0 : i32
    %c0_i32_0 = arith.constant 0 : i32
    %c0_i32_1 = arith.constant 0 : i32
    return %c0_i32, %c0_i32_0 : i32, i32
  }
  func.func @transform_7(%arg0: i32, %arg1: i32) -> (i32, i32) {
    %c0_i32 = arith.constant 0 : i32
    %c0_i32_0 = arith.constant 0 : i32
    %c0_i32_1 = arith.constant 0 : i32
    return %c0_i32, %c0_i32_0 : i32, i32
  }
  func.func @transform_8(%arg0: i32, %arg1: i32) -> (i32, i32, i32) {
    %c0_i32 = arith.constant 0 : i32
    %c0_i32_0 = arith.constant 0 : i32
    return %arg0, %c0_i32, %arg1 : i32, i32, i32
  }
  func.func @transform_9(%arg0: i32, %arg1: i32) -> (i32, i32, i32) {
    %c0_i32 = arith.constant 0 : i32
    %c0_i32_0 = arith.constant 0 : i32
    return %arg0, %c0_i32, %arg1 : i32, i32, i32
  }
  func.func @transform_10(%arg0: i32, %arg1: i32) -> (i32, i32) {
    %c2_i32 = arith.constant 2 : i32
    %0 = arith.muli %arg0, %c2_i32 : i32
    %1 = arith.addi %0, %arg1 : i32
    %c0_i32 = arith.constant 0 : i32
    %c0_i32_0 = arith.constant 0 : i32
    return %1, %c0_i32 : i32, i32
  }
}

</mosaic_0001>

<bundles_post_ra>
// kernel: mutual_info_reg_2d.1
= control target key start
LH: loop header
LB: loop body
LE: loop exit
PB: predicated region body
PF: predicated region fallthrough
CT: control target
= control target key end

     0   :  { %s2414_s0 = inlined_call_operand.vmem [shape: f32[2,4,256], index: 0, kind: input, shape index: {}]   ;;  %s2415_s1 = inlined_call_operand.vmem [shape: f32[2,4,256], index: 1, kind: input, shape index: {}]   ;;  %s2416_s2 = inlined_call_operand.vmem [shape: f32[2,32,256], index: 2, kind: input, shape index: {}]   ;;  %s2417_s3 = inlined_call_operand.vmem [shape: f32[2,32,256], index: 3, kind: input, shape index: {}]   ;;  %s2418_s4 = inlined_call_operand.vmem [shape: f32[64,4], index: 4, kind: input, shape index: {}]   ;;  %s2419_s5 = inlined_call_operand.vmem [shape: f32[64,4], index: 5, kind: input, shape index: {}]   ;;  %s2420_s6 = inlined_call_operand.vmem [shape: f32[64,1], index: 6, kind: input, shape index: {}]   ;;  %s2421_s7 = inlined_call_operand.vmem [shape: f32[64,1], index: 7, kind: input, shape index: {}]   ;;  %s2422_s8 = inlined_call_operand.vmem [shape: f32[2,32,256], index: 8, kind: output, shape index: {0}]   ;;  %s2423_s9 = inlined_call_operand.vmem [shape: f32[2,32,256], index: 9, kind: output, shape index: {1}]   ;;  %s2424_s10 = inlined_call_operand.vmem [shape: f32[32,128], index: 10, kind: output, shape index: {2}]  }
   0x1   :  { %2429 = sst [smem:[#allocation10_spill]] %s2416_s2 }
   0x2   :  { %2430 = sst [smem:[#allocation11_spill]] %s2417_s3 }
   0x3   :  { %s1984_s13 = smov 0   ;;  %s1986_s14 = smov 0  }
   0x4   :  { %s1988_s15 = smov 0   ;;  %s1990_s16 = smov 0  }
   0x5   :  { %s1992_s17 = smov 0   ;;  %s1994_s18 = smov 0  }
   0x6   :  { %s1996_s19 = smov 0  }
   0x7 LB: > { %2431 = sst [smem:[#allocation6_spill]] %s1918_s17  ;;  %s30_s20 = sadd.s32 1, %s1918_s17  ;;  %s1926_s19 = sphi %s1996_s19, %s21_s19   ;;  %s1922_s18 = sphi %s1994_s18, %s2442_s18   ;;  %s1918_s17 = sphi %s1992_s17, %s2441_s17   ;;  %s1914_s16 = sphi %s1990_s16, %s2440_s16   ;;  %s1910_s15 = sphi %s1988_s15, %s2439_s15   ;;  %s1906_s14 = sphi %s1986_s14, %s2444_s14   ;;  %s1902_s13 = sphi %s1984_s13, %s2443_s13  }
   0x8   : > { %2432 = sst [smem:[#allocation7_spill]] %s1922_s18  ;;  %p31_p0 = scmp.ge.s32.totalorder %s30_s20, 2 }
   0x9   : > { %s33_s21 = sadd.s32 1, %s1922_s18  ;;  %s1588_s22 = sadd.s32 4294967295, %s1926_s19  }
   0xa   : > { %p105_p1 = scmp.ne.s32.totalorder %s1906_s14, %s1902_s13  ;;  %s2446_s20 = smov (%p31_p0, %s30_s20), 0 }
   0xb   : > { %2433 = sst [smem:[#allocation8_spill]] %s2446_s20  ;;  %s2448_s21 = smov (!%p31_p0, %s33_s21), %s1922_s18 }
   0xc   : > { %p106_p2 = scmp.eq.s32.totalorder %s1926_s19, 0  ;;  %p35_p3 = scmp.ge.s32.totalorder %s2448_s21, 2 }
   0xd   : > { %p249_p4 = scmp.eq.s32.totalorder %s1588_s22, 3  ;;  %s94_s23 = ssub.s32 %s1918_s17, %s2446_s20 }
   0xe   : > { %p2030_p5 = por %p106_p2, %p105_p1  ;;  %s2450_s21 = smov (%p35_p3, %s2448_s21), 0 }
   0xf   : > { %2435 = sst [smem:[#allocation9_spill]] %s2450_s21  ;;  %p2036_p6 = por %p249_p4, %p105_p1 }
  0x10   : > { %s93_s26 = ssub.s32 %s1922_s18, %s2450_s21  ;;  %s98_s28 = sadd.s32 1, %s1906_s14 }
  0x11   : > { %s95_s27 = sor.u32 %s94_s23, %s93_s26  ;;  %p1593_p8 = scmp.ge.s32.totalorder %s1926_s19, 4 }
  0x12   : > { %p96_p7 = scmp.eq.s32.totalorder %s95_s27, 0 }
  0x13   : > { %341 = sbr.rel (%p1593_p8) target bundleno = 50 (0x32), region = 32 }
  0x14   : > { %s2044_s29 = scalar_select %p96_p7, %s1906_s14, %s98_s28  }
  0x1a   : > { %366 = sbr.rel (!%p2030_p5) target bundleno = 38 (0x26), region = 44  ;;  %s368_s30 = sand.u32 (%p2030_p5), 1, %s1906_s14  }
  0x1b   : > { %s1595_s11 = sshll.u32 (%p2030_p5), %s1922_s18, 3  ;;  %s1594_s12 = sshll.u32 (%p2030_p5), %s368_s30, 5 }
  0x1c   : > { %s372_s22 = sadd.s32 (%p2030_p5), %s1918_s17, %s1595_s11  ;;  %s2437_s2 = sld [smem:[#allocation10_spill]] (%p2030_p5) }
  0x1d   : > { %s1596_s20 = sshll.u32 (%p2030_p5), %s372_s22, 3  ;;  %s370_s27 = scalar_lea.vmem (%p2030_p5), [#allocation2], %s1594_s12 }
  0x22   : > { %s374_s26 = scalar_lea.vmem %s2437_s2, %s1596_s20 }
  0x23   : > { %v408_v0 = vld [vmem:[%s374_s26] sm:$0xff]  ;;  %v410_v1 = vld [vmem:[%s374_s26 + $0x10] sm:$0xff] }
  0x24   : > { %v412_v2 = vld [vmem:[%s374_s26 + $0x20] sm:$0xff]  ;;  %409 = vst [vmem:[%s370_s27] sm:$0xff] %v408_v0  ;;  %411 = vst [vmem:[%s370_s27 + $0x8] sm:$0xff] %v410_v1  ;;  %v414_v3 = vld [vmem:[%s374_s26 + $0x30] sm:$0xff] }
  0x25   : > { %413 = vst [vmem:[%s370_s27 + $0x10] sm:$0xff] %v412_v2  ;;  %415 = vst [vmem:[%s370_s27 + $0x18] sm:$0xff] %v414_v3 }
  0x26 PF: > { %421 = sbr.rel (!%p2030_p5) target bundleno = 50 (0x32), region = 82  ;;  %s423_s28 = sand.u32 (%p2030_p5), 1, %s1906_s14  }
  0x27   : > { %s1598_s30 = sshll.u32 (%p2030_p5), %s1922_s18, 3  ;;  %s1597_s21 = sshll.u32 (%p2030_p5), %s423_s28, 5 }
  0x28   : > { %s427_s20 = sadd.s32 (%p2030_p5), %s1918_s17, %s1598_s30  ;;  %s2438_s3 = sld [smem:[#allocation11_spill]] (%p2030_p5) }
  0x29   : > { %s1599_s11 = sshll.u32 (%p2030_p5), %s427_s20, 3  ;;  %s425_s26 = scalar_lea.vmem (%p2030_p5), [#allocation3], %s1597_s21 }
  0x2e   : > { %s429_s12 = scalar_lea.vmem %s2438_s3, %s1599_s11 }
  0x2f   : > { %v463_v4 = vld [vmem:[%s429_s12] sm:$0xff]  ;;  %v465_v5 = vld [vmem:[%s429_s12 + $0x10] sm:$0xff] }
  0x30   : > { %v467_v6 = vld [vmem:[%s429_s12 + $0x20] sm:$0xff]  ;;  %464 = vst [vmem:[%s425_s26] sm:$0xff] %v463_v4  ;;  %466 = vst [vmem:[%s425_s26 + $0x8] sm:$0xff] %v465_v5  ;;  %v469_v7 = vld [vmem:[%s429_s12 + $0x30] sm:$0xff] }
  0x31   : > { %468 = vst [vmem:[%s425_s26 + $0x10] sm:$0xff] %v467_v6  ;;  %470 = vst [vmem:[%s425_s26 + $0x18] sm:$0xff] %v469_v7 }
  0x32 PF: > { %p1600_p9 = scmp.ge.s32.totalorder %s1926_s19, 1  ;;  %p475_p10 = scmp.lt.s32.totalorder %s1926_s19, 5 }
  0x34   : > { %p476_p11 = pnand %p1600_p9, %p475_p10 }
  0x35   : > { %p555_p12 = scmp.lt.s32.totalorder (!%p476_p11), %s1914_s16, 1  ;;  %p557_p13 = scmp.lt.s32.totalorder (!%p476_p11), %s1910_s15, 1  ;;  %v604_v8 = vld [vmem:[%s2418_s4] sm:$0xff] (!%p476_p11)  ;;  %vm660_vm0 = vcmask (!%p476_p11), 31744   ;;  %v1928_v10 = vmov (!%p476_p11), 0   ;;  %v618_v12 = vld [vmem:[%s2420_s6 + $0x30] sm:$0xff] (!%p476_p11) }
  0x36   : > { %479 = sbr.rel (%p476_p11) target bundleno = 636 (0x27c), region = 120  ;;  %v801_v9 = vld [vmem:[%s2419_s5] sm:$0xff] (!%p476_p11)  ;;  %1669 = vmatprep.mubr.msk.f32.mxu0 (!%p476_p11), %vm660_vm0, %v604_v8  ;;  %1754 = vset.pattern.permute.xlu0 (!%p476_p11), %v1928_v10  ;;  %v617_v13 = vld [vmem:[%s2420_s6 + $0x28] sm:$0xff] (!%p476_p11)  ;;  %vm581_vm1 = vcmask (!%p476_p11), 1043456   ;;  %v619_v24 = vld [vmem:[%s2420_s6 + $0x38] sm:$0xff] (!%p476_p11)  ;;  %s482_s24 = sand.u32 (!%p476_p11), 1, %s1902_s13  }
  0x37   : > { %1683 = vmatprep.mubr.msk.f32.mxu1 (!%p476_p11), %vm660_vm0, %v801_v9  ;;  %1755 = vset.pattern.permute.xlu1 (!%p476_p11), %v1928_v10  ;;  %v616_v11 = vld [vmem:[%s2420_s6 + $0x20] sm:$0xff] (!%p476_p11)  ;;  %v814_v21 = vld [vmem:[%s2421_s7 + $0x28] sm:$0xff] (!%p476_p11)  ;;  %v815_v27 = vld [vmem:[%s2421_s7 + $0x30] sm:$0xff] (!%p476_p11)  ;;  %s2226_s27 = sshll.u32 (!%p476_p11), %s482_s24, 5 }
  0x38   : > { %642 = vperm.xlu0 (!%p476_p11), %1754, %v616_v11   ;;  %652 = vperm.xlu1 (!%p476_p11), %1755, %v618_v12   ;;  %v813_v16 = vld [vmem:[%s2421_s7 + $0x20] sm:$0xff] (!%p476_p11)  ;;  %v816_v30 = vld [vmem:[%s2421_s7 + $0x38] sm:$0xff] (!%p476_p11)  ;;  %v613_v36 = vld [vmem:[%s2420_s6 + $0x8] sm:$0xff] (!%p476_p11)  ;;  %s2229_s13 = scalar_lea.vmem (!%p476_p11), [#allocation2], %s2226_s27  ;;  %s2233_s28 = scalar_lea.vmem (!%p476_p11), [#allocation3], %s2226_s27 }
  0x39   : > { %v612_v33 = vld [vmem:[%s2420_s6] sm:$0xff] (!%p476_p11)  ;;  %v614_v39 = vld [vmem:[%s2420_s6 + $0x10] sm:$0xff] (!%p476_p11)  ;;  %v810_v43 = vld [vmem:[%s2421_s7 + $0x8] sm:$0xff] (!%p476_p11)  ;;  %s2259_s30 = scalar_lea.vmem (!%p476_p11), [#allocation4], %s2226_s27 }
  0x3a   : > { %v809_v42 = vld [vmem:[%s2421_s7] sm:$0xff] (!%p476_p11)  ;;  %v615_v44 = vld [vmem:[%s2420_s6 + $0x18] sm:$0xff] (!%p476_p11)  ;;  %v811_v45 = vld [vmem:[%s2421_s7 + $0x10] sm:$0xff] (!%p476_p11) }
  0x3b   : > { %v812_v46 = vld [vmem:[%s2421_s7 + $0x18] sm:$0xff] (!%p476_p11)  ;;  %v605_v51 = vld [vmem:[%s2418_s4 + $0x8] sm:$0xff] (!%p476_p11)  ;;  %v606_v53 = vld [vmem:[%s2418_s4 + $0x10] sm:$0xff] (!%p476_p11) }
  0x3c   : > { %647 = vperm.xlu0 (!%p476_p11), %1754, %v617_v13   ;;  %839 = vperm.xlu1 (!%p476_p11), %1755, %v813_v16   ;;  %v802_v52 = vld [vmem:[%s2419_s5 + $0x8] sm:$0xff] (!%p476_p11)  ;;  %v803_v54 = vld [vmem:[%s2419_s5 + $0x10] sm:$0xff] (!%p476_p11)  ;;  %v607_v55 = vld [vmem:[%s2418_s4 + $0x18] sm:$0xff] (!%p476_p11) }
  0x3d   : > { %s556_s21 = scalar_select %p555_p12, %s1914_s16, 1  ;;  %v804_v56 = vld [vmem:[%s2419_s5 + $0x18] sm:$0xff]  ;;  %v608_v57 = vld [vmem:[%s2418_s4 + $0x20] sm:$0xff]  ;;  %v609_v59 = vld [vmem:[%s2418_s4 + $0x28] sm:$0xff] }
  0x3e   : > { %s558_s20 = scalar_select %p557_p13, %s1910_s15, 1  ;;  %v805_v58 = vld [vmem:[%s2419_s5 + $0x20] sm:$0xff]  ;;  %v806_v60 = vld [vmem:[%s2419_s5 + $0x28] sm:$0xff]  ;;  %v610_v61 = vld [vmem:[%s2418_s4 + $0x30] sm:$0xff] }
  0x3f   : > { %s1605_s11 = sshll.u32 %s556_s21, 1  ;;  %v807_v62 = vld [vmem:[%s2419_s5 + $0x30] sm:$0xff]  ;;  %v611_v63 = vld [vmem:[%s2418_s4 + $0x38] sm:$0xff]  ;;  %s2269_s21 = scalar_lea.vmem [#allocation5], %s2226_s27 }
  0x40   : > { %s560_s22 = sadd.s32 %s1605_s11, %s558_s20  ;;  %844 = vperm.xlu0 %1754, %v814_v21   ;;  %657 = vperm.xlu1 %1755, %v619_v24   ;;  %v808_v0 = vld [vmem:[%s2419_s5 + $0x38] sm:$0xff]  ;;  %s1609_s20 = sshll.u32 %s1914_s16, 1 }
  0x41   : > { %s1606_s26 = sshll.u32 %s560_s22, 2  ;;  %s572_s11 = sadd.s32 %s1910_s15, %s1609_s20 }
  0x42   : > { %s562_s2 = scalar_lea.vmem %s2414_s0, %s1606_s26  ;;  %s570_s17 = scalar_lea.vmem %s2415_s1, %s1606_s26 }
  0x43   : > { %v579_v14 = vld [vmem:[%s562_s2] sm:$0xf]  ;;  %p573_p0 = scmp.lt.s32.totalorder %s572_s11, 3  ;;  %s1643_s23 = sshll.u32 (%p2036_p6), %s1914_s16, 3 }
  0x44   : > { %v592_v15 = vld [vmem:[%s570_s17] sm:$0xf]  ;;  %v580_v17 = vmul.f32 %v579_v14, %v579_v14  ;;  %849 = vperm.xlu0 %1754, %v815_v27   ;;  %854 = vperm.xlu1 %1755, %v816_v30   ;;  %s1301_s12 = sadd.s32 (%p2036_p6), %s1910_s15, %s1643_s23 }
  0x45   : > { %v593_v18 = vmul.f32 %v592_v15, %v592_v15  ;;  %s2452_s11 = smov (!%p573_p0, %s572_s11), 3  ;;  %s1644_s26 = sshll.u32 (%p2036_p6), %s1301_s12, 3 }
  0x46   : > { %v582_v19 = vsel %vm581_vm1, %v580_v17, 0.0  ;;  %s1610_s22 = sshll.u32 %s2452_s11, 3 }
  0x47   : > { %v594_v20 = vsel %vm581_vm1, %v593_v18, 0.0  ;;  %v583_v22 = vrot.slane %v582_v19, 4  ;;  %s576_s2 = scalar_lea.vmem %s2424_s10, %s1610_s22 }
  0x48   : > { %v595_v23 = vrot.slane %v594_v20, 4  ;;  %622 = vperm.xlu0 %1754, %v612_v33   ;;  %627 = vperm.xlu1 %1755, %v613_v36  }
  0x49   : > { %v584_v25 = vadd.f32 %v583_v22, %v582_v19 }
  0x4a   : > { %v596_v26 = vadd.f32 %v595_v23, %v594_v20 }
  0x4b   : > { %v585_v28 = vrot.slane %v584_v25, 2 }
  0x4c   : > { %v597_v29 = vrot.slane %v596_v26, 2  ;;  %632 = vperm.xlu0 %1754, %v614_v39   ;;  %819 = vperm.xlu1 %1755, %v809_v42  }
  0x4d   : > { %v586_v31 = vadd.f32 %v585_v28, %v584_v25 }
  0x4e   : > { %v598_v32 = vadd.f32 %v597_v29, %v596_v26 }
  0x4f   : > { %v587_v34 = vrot.slane %v586_v31, 1 }
  0x50   : > { %v599_v35 = vrot.slane %v598_v32, 1  ;;  %824 = vperm.xlu0 %1754, %v810_v43   ;;  %637 = vperm.xlu1 %1755, %v615_v44  }
  0x51   : > { %v588_v37 = vadd.f32 %v587_v34, %v586_v31 }
  0x52   : > { %v600_v38 = vadd.f32 %v599_v35, %v598_v32 }
  0x53   : > { %v589_v40 = vadd.f32 1e-06, %v588_v37 }
  0x54   : > { %v601_v41 = vadd.f32 1e-06, %v600_v38  ;;  %829 = vperm.xlu0 %1754, %v811_v45   ;;  %834 = vperm.xlu1 %1755, %v812_v46  }
  0x55   : > { %1756 = vrsqrt.f32 %v589_v40 }
  0x56   : > { %1758 = vrsqrt.f32 %v601_v41 }
  0x5f   : > { %v1757_v47 = vpop.eup %1756 }
  0x60   : > { %v1759_v48 = vpop.eup %1758  ;;  %v591_v49 = vmul.f32 %v1757_v47, %v579_v14 }
  0x61   : > { %v603_v50 = vmul.f32 %v1759_v48, %v592_v15 }
  0x62   : > { %1667 = vmatprep.subr.msk.mxu0 %vm581_vm1, %v591_v49 }
  0x63   : > { %1681 = vmatprep.subr.msk.mxu1 %vm581_vm1, %v603_v50  ;;  %1668 = vmatpush3.msk.msra.mxu0 %vm581_vm1, %v591_v49 }
  0x64   : > { %1682 = vmatpush3.msk.msra.mxu1 %vm581_vm1, %v603_v50  ;;  %1670 = vmatmul.mubr.msk.f32.vlgmr.msra.gmra.mrb[0].mxu0 %vm660_vm0, %v605_v51 }
  0x65   : > { %1684 = vmatmul.mubr.msk.f32.vlgmr.msra.gmra.mrb[0].mxu1 %vm660_vm0, %v802_v52  ;;  %1672 = vmatprep.mubr.msk.f32.mxu0 %vm660_vm0, %v606_v53 }
  0x66   : > { %1686 = vmatprep.mubr.msk.f32.mxu1 %vm660_vm0, %v803_v54 }
  0x68   : > { %1673 = vmatmul.mubr.msk.f32.gmra.mrb[2].mxu0 %vm660_vm0, %v607_v55 }
  0x69   : > { %1687 = vmatmul.mubr.msk.f32.gmra.mrb[2].mxu1 %vm660_vm0, %v804_v56  ;;  %1675 = vmatprep.mubr.msk.f32.mxu0 %vm660_vm0, %v608_v57 }
  0x6a   : > { %1689 = vmatprep.mubr.msk.f32.mxu1 %vm660_vm0, %v805_v58 }
  0x6c   : > { %1676 = vmatmul.mubr.msk.f32.gmra.mrb[4].mxu0 %vm660_vm0, %v609_v59 }
  0x6d   : > { %1690 = vmatmul.mubr.msk.f32.gmra.mrb[4].mxu1 %vm660_vm0, %v806_v60  ;;  %1678 = vmatprep.mubr.msk.f32.mxu0 %vm660_vm0, %v610_v61 }
  0x6e   : > { %1692 = vmatprep.mubr.msk.f32.mxu1 %vm660_vm0, %v807_v62 }
  0x70   : > { %1679 = vmatmul.mubr.msk.f32.gmra.mrb[6].mxu0 %vm660_vm0, %v611_v63 }
  0x71   : > { %1693 = vmatmul.mubr.msk.f32.gmra.mrb[6].mxu1 %vm660_vm0, %v808_v0 }
  0xb7   : > { %v653_v1 = vpop.permute.xlu1 %652  ;;  %v643_v2 = vpop.permute.xlu0 %642 }
  0xbb   : > { %v840_v3 = vpop.permute.xlu1 %839  ;;  %v648_v4 = vpop.permute.xlu0 %647 }
  0xbf   : > { %v658_v5 = vpop.permute.xlu1 %657  ;;  %v845_v6 = vpop.permute.xlu0 %844 }
  0xc3   : > { %v855_v7 = vpop.permute.xlu1 %854  ;;  %v850_v8 = vpop.permute.xlu0 %849 }
  0xc7   : > { %v628_v9 = vpop.permute.xlu1 %627  ;;  %v623_v10 = vpop.permute.xlu0 %622 }
  0xcb   : > { %v820_v11 = vpop.permute.xlu1 %819  ;;  %v633_v12 = vpop.permute.xlu0 %632 }
  0xcf   : > { %v638_v13 = vpop.permute.xlu1 %637  ;;  %v825_v14 = vpop.permute.xlu0 %824 }
  0xd3   : > { %v835_v23 = vpop.permute.xlu1 %834  ;;  %v830_v28 = vpop.permute.xlu0 %829 }
 0x137   : > { %v1671_v15 = vpop.f32.mrb[0].mxu0 }
 0x138   : > { %v760_v16 = vadd.f32 %v1671_v15, %v628_v9  ;;  %v1685_v17 = vpop.f32.mrb[0].mxu1  ;;  %v754_v18 = vpop.f32.mrb[1].mxu0 }
 0x139   : > { %v956_v19 = vadd.f32 %v1685_v17, %v825_v14  ;;  %v755_v20 = vadd.f32 %v754_v18, %v623_v10  ;;  %v950_v21 = vpop.f32.mrb[1].mxu1 }
 0x13a   : > { %1760 = vtanh.f32 %v760_v16  ;;  %v951_v22 = vadd.f32 %v950_v21, %v820_v11 }
 0x13b   : > { %1762 = vtanh.f32 %v956_v19  ;;  %v1674_v24 = vpop.f32.mrb[2].mxu0 }
 0x13c   : > { %1764 = vtanh.f32 %v755_v20  ;;  %v770_v25 = vadd.f32 %v1674_v24, %v638_v13  ;;  %v1688_v26 = vpop.f32.mrb[2].mxu1  ;;  %v764_v27 = vpop.f32.mrb[3].mxu0 }
 0x13d   : > { %1766 = vtanh.f32 %v951_v22  ;;  %v966_v29 = vadd.f32 %v1688_v26, %v835_v23  ;;  %v765_v30 = vadd.f32 %v764_v27, %v633_v12  ;;  %v960_v31 = vpop.f32.mrb[3].mxu1 }
 0x13e   : > { %1768 = vtanh.f32 %v770_v25  ;;  %v961_v32 = vadd.f32 %v960_v31, %v830_v28 }
 0x13f   : > { %1770 = vtanh.f32 %v966_v29  ;;  %v1677_v33 = vpop.f32.mrb[4].mxu0 }
 0x140   : > { %1772 = vtanh.f32 %v765_v30  ;;  %v780_v34 = vadd.f32 %v1677_v33, %v648_v4  ;;  %v1691_v35 = vpop.f32.mrb[4].mxu1  ;;  %v774_v36 = vpop.f32.mrb[5].mxu0  ;;  %v1022_v33 = vld [vmem:[%s2229_s13 + $0x8] sm:$0xff] }
 0x141   : > { %1774 = vtanh.f32 %v961_v32  ;;  %v976_v37 = vadd.f32 %v1691_v35, %v845_v6  ;;  %v775_v38 = vadd.f32 %v774_v36, %v643_v2  ;;  %v970_v39 = vpop.f32.mrb[5].mxu1 }
 0x142   : > { %1776 = vtanh.f32 %v780_v34  ;;  %v971_v40 = vadd.f32 %v970_v39, %v840_v3 }
 0x143   : > { %1778 = vtanh.f32 %v976_v37  ;;  %v1680_v41 = vpop.f32.mrb[6].mxu0  ;;  %v1034_v37 = vld [vmem:[%s2233_s28 + $0x8] sm:$0xff] }
 0x144   : > { %v2193_v42 = vpop.eup %1760  ;;  %1780 = vtanh.f32 %v775_v38  ;;  %v790_v43 = vadd.f32 %v1680_v41, %v658_v5  ;;  %v1694_v44 = vpop.f32.mrb[6].mxu1 }
 0x145   : > { %v784_v45 = vpop.f32.mrb[7].mxu0  ;;  %v2195_v46 = vpop.eup %1762  ;;  %1782 = vtanh.f32 %v971_v40  ;;  %v986_v47 = vadd.f32 %v1694_v44, %v855_v7 }
 0x146   : > { %v785_v48 = vadd.f32 %v784_v45, %v653_v1  ;;  %v980_v49 = vpop.f32.mrb[7].mxu1  ;;  %v2197_v50 = vpop.eup %1764  ;;  %v2201_v51 = vsub.f32 %v2193_v42, %v2195_v46  ;;  %1784 = vtanh.f32 %v790_v43 }
 0x147   : > { %v981_v52 = vadd.f32 %v980_v49, %v850_v8  ;;  %v2203_v53 = vpop.eup %1766  ;;  %1786 = vtanh.f32 %v986_v47  ;;  %v1021_v47 = vld [vmem:[%s2229_s13] sm:$0xff] }
 0x148   : > { %v2205_v54 = vpop.eup %1768  ;;  %v2209_v55 = vsub.f32 %v2197_v50, %v2203_v53  ;;  %1788 = vtanh.f32 %v785_v48  ;;  %v1226_v43 = vmul.f32 %v2201_v51, %v2201_v51 }
 0x149   : > { %v2211_v56 = vpop.eup %1770  ;;  %1790 = vtanh.f32 %v981_v52 }
 0x14a   : > { %v2213_v57 = vpop.eup %1772  ;;  %v2217_v58 = vsub.f32 %v2205_v54, %v2211_v56  ;;  %v2240_v44 = vmul.f32 %v2209_v55, %v2209_v55 }
 0x14b   : > { %v2219_v59 = vpop.eup %1774 }
 0x14c   : > { %v1777_v60 = vpop.eup %1776  ;;  %v2223_v61 = vsub.f32 %v2213_v57, %v2219_v59  ;;  %v2248_v51 = vmul.f32 %v2217_v58, %v2217_v58 }
 0x14d   : > { %v1779_v62 = vpop.eup %1778  ;;  %v998_v63 = vmul.f32 0.5, %v1777_v60  ;;  %v1198_v0 = vmul.f32 -2.0, %v1777_v60 }
 0x14e   : > { %v1781_v1 = vpop.eup %1780  ;;  %v1010_v2 = vmul.f32 0.5, %v1779_v62  ;;  %v1210_v3 = vmul.f32 -2.0, %v1779_v62  ;;  %v2252_v55 = vmul.f32 %v2223_v61, %v2223_v61 }
 0x14f   : > { %v1783_v4 = vpop.eup %1782  ;;  %v1003_v5 = vmul.f32 1.442695, %v998_v63  ;;  %v997_v6 = vmul.f32 0.5, %v1781_v1  ;;  %v1203_v8 = vmul.f32 1.442695, %v1198_v0  ;;  %v1197_v10 = vmul.f32 -2.0, %v1781_v1 }
 0x150   : > { %v1785_v7 = vpop.eup %1784  ;;  %v1015_v9 = vmul.f32 1.442695, %v1010_v2  ;;  %v1009_v11 = vmul.f32 0.5, %v1783_v4  ;;  %v1215_v16 = vmul.f32 1.442695, %v1210_v3  ;;  %v1209_v17 = vmul.f32 -2.0, %v1783_v4 }
 0x151   : > { %v1787_v12 = vpop.eup %1786  ;;  %1792 = vpow2.f32 %v1003_v5  ;;  %v1001_v13 = vmul.f32 1.442695, %v997_v6  ;;  %v1000_v14 = vmul.f32 0.5, %v1785_v7  ;;  %v1201_v21 = vmul.f32 1.442695, %v1197_v10  ;;  %v1033_v63 = vld [vmem:[%s2233_s28] sm:$0xff] }
 0x152   : > { %v1789_v15 = vpop.eup %1788  ;;  %1794 = vpow2.f32 %v1015_v9  ;;  %v1013_v18 = vmul.f32 1.442695, %v1009_v11  ;;  %v1012_v19 = vmul.f32 0.5, %v1787_v12  ;;  %v1200_v22 = vmul.f32 -2.0, %v1785_v7  ;;  %v1024_v3 = vld [vmem:[%s2229_s13 + $0x18] sm:$0xff] }
 0x153   : > { %v1791_v20 = vpop.eup %1790  ;;  %1796 = vpow2.f32 %v1203_v8  ;;  %v1007_v23 = vmul.f32 1.442695, %v1000_v14  ;;  %v999_v24 = vmul.f32 0.5, %v1789_v15  ;;  %v1213_v25 = vmul.f32 1.442695, %v1209_v17  ;;  %v1036_v11 = vld [vmem:[%s2233_s28 + $0x18] sm:$0xff] }
 0x154   : > { %1798 = vpow2.f32 %v1001_v13  ;;  %v1212_v26 = vmul.f32 -2.0, %v1787_v12  ;;  %v1019_v27 = vmul.f32 1.442695, %v1012_v19  ;;  %v1011_v28 = vmul.f32 0.5, %v1791_v20 }
 0x155   : > { %1800 = vpow2.f32 %v1215_v16  ;;  %v1207_v29 = vmul.f32 1.442695, %v1200_v22  ;;  %v1199_v30 = vmul.f32 -2.0, %v1789_v15  ;;  %v1005_v31 = vmul.f32 1.442695, %v999_v24 }
 0x156   : > { %1802 = vpow2.f32 %v1013_v18  ;;  %v1211_v32 = vmul.f32 -2.0, %v1791_v20  ;;  %v1219_v34 = vmul.f32 1.442695, %v1212_v26  ;;  %v1017_v36 = vmul.f32 1.442695, %v1011_v28  ;;  %v1023_v20 = vld [vmem:[%s2229_s13 + $0x10] sm:$0xff]  ;;  %s1303_s13 = scalar_lea.vmem (%p2036_p6), %s2422_s8, %s1644_s26 }
 0x157   : > { %1804 = vpow2.f32 %v1201_v21  ;;  %v1205_v38 = vmul.f32 1.442695, %v1199_v30 }
 0x158   : > { %1806 = vpow2.f32 %v1007_v23  ;;  %v1217_v45 = vmul.f32 1.442695, %v1211_v32 }
 0x159   : > { %1808 = vpow2.f32 %v1213_v25 }
 0x15a   : > { %1810 = vpow2.f32 %v1019_v27 }
 0x15b   : > { %v1793_v35 = vpop.eup %1792  ;;  %1812 = vpow2.f32 %v1207_v29  ;;  %v1035_v29 = vld [vmem:[%s2233_s28 + $0x10] sm:$0xff] }
 0x15c   : > { %v1026_v39 = vmul.f32 %v1793_v35, %v1022_v33  ;;  %v1182_v40 = vmul.f32 %v1793_v35, %v1793_v35  ;;  %v1795_v41 = vpop.eup %1794  ;;  %1814 = vpow2.f32 %v1005_v31 }
 0x15d   : > { %v1797_v48 = vpop.eup %1796  ;;  %1816 = vpow2.f32 %v1219_v34  ;;  %v1038_v52 = vmul.f32 %v1795_v41, %v1034_v37  ;;  %v1186_v60 = vmul.f32 %v1795_v41, %v1795_v41 }
 0x15e   : > { %v2244_v49 = vadd.f32 %v2193_v42, %v1026_v39  ;;  %v1799_v62 = vpop.eup %1798  ;;  %1818 = vpow2.f32 %v1017_v36  ;;  %v1190_v0 = vmul.f32 %v1182_v40, %v1182_v40 }
 0x15f   : > { %v1801_v1 = vpop.eup %1800  ;;  %1820 = vpow2.f32 %v1205_v38  ;;  %v1025_v42 = vmul.f32 %v1799_v62, %v1021_v47  ;;  %v2256_v2 = vadd.f32 %v2195_v46, %v1038_v52  ;;  %v1181_v4 = vmul.f32 %v1799_v62, %v1799_v62 }
 0x160   : > { %1046 = vst [vmem:[%s2259_s30 + $0x8] sm:$0xff] %v2244_v49  ;;  %v1630_v58 = vmul.f32 -1.442695, %v2244_v49  ;;  %v1803_v61 = vpop.eup %1802  ;;  %1822 = vpow2.f32 %v1217_v45  ;;  %v1194_v5 = vmul.f32 %v1186_v60, %v1186_v60  ;;  %v1230_v6 = vadd.f32 %v1226_v43, %v1190_v0 }
 0x161   : > { %v1805_v7 = vpop.eup %1804  ;;  %v2266_v8 = vadd.f32 %v2197_v50, %v1025_v42  ;;  %v1037_v46 = vmul.f32 %v1803_v61, %v1033_v63  ;;  %1050 = vst [vmem:[%s2269_s21 + $0x8] sm:$0xff] %v2256_v2  ;;  %v1634_v9 = vmul.f32 -1.442695, %v2256_v2  ;;  %v1185_v12 = vmul.f32 %v1803_v61, %v1803_v61 }
 0x162   : > { %1824 = vpow2.f32 %v1630_v58  ;;  %v1807_v10 = vpop.eup %1806  ;;  %v1189_v13 = vmul.f32 %v1181_v4, %v1181_v4  ;;  %v1234_v14 = vmul.f32 %v1801_v1, %v1230_v6  ;;  %v1238_v15 = vadd.f32 %v1226_v43, %v1194_v5 }
 0x163   : > { %v1809_v50 = vpop.eup %1808  ;;  %v1028_v16 = vmul.f32 %v1807_v10, %v1024_v3  ;;  %v2276_v17 = vadd.f32 %v2203_v53, %v1037_v46  ;;  %v1629_v18 = vmul.f32 -1.442695, %v2266_v8  ;;  %1826 = vpow2.f32 %v1634_v9  ;;  %1045 = vst [vmem:[%s2259_s30] sm:$0xff] %v2266_v8 }
 0x164   : > { %v1811_v19 = vpop.eup %1810  ;;  %v1184_v21 = vmul.f32 %v1807_v10, %v1807_v10  ;;  %v1193_v22 = vmul.f32 %v1185_v12, %v1185_v12  ;;  %v1229_v23 = vadd.f32 %v2240_v44, %v1189_v13  ;;  %v1242_v24 = vmul.f32 %v1797_v48, %v1238_v15 }
 0x165   : > { %v1813_v25 = vpop.eup %1812  ;;  %v2284_v26 = vadd.f32 %v2205_v54, %v1028_v16  ;;  %v1040_v53 = vmul.f32 %v1811_v19, %v1036_v11  ;;  %1049 = vst [vmem:[%s2269_s21] sm:$0xff] %v2276_v17  ;;  %1828 = vpow2.f32 %v1629_v18  ;;  %v1633_v27 = vmul.f32 -1.442695, %v2276_v17 }
 0x166   : > { %v1815_v28 = vpop.eup %1814  ;;  %v1188_v30 = vmul.f32 %v1811_v19, %v1811_v19  ;;  %v1192_v31 = vmul.f32 %v1184_v21, %v1184_v21  ;;  %v1233_v32 = vmul.f32 %v1809_v50, %v1229_v23  ;;  %v1237_v33 = vadd.f32 %v2240_v44, %v1193_v22 }
 0x167   : > { %v1817_v34 = vpop.eup %1816  ;;  %v1027_v35 = vmul.f32 %v1815_v28, %v1023_v20  ;;  %v2292_v36 = vadd.f32 %v2211_v56, %v1040_v53  ;;  %1048 = vst [vmem:[%s2259_s30 + $0x18] sm:$0xff] %v2284_v26  ;;  %v1632_v54 = vmul.f32 -1.442695, %v2284_v26  ;;  %1830 = vpow2.f32 %v1633_v27 }
 0x168   : > { %v1819_v37 = vpop.eup %1818  ;;  %v1183_v38 = vmul.f32 %v1815_v28, %v1815_v28  ;;  %v1196_v39 = vmul.f32 %v1188_v30, %v1188_v30  ;;  %v1232_v40 = vadd.f32 %v2248_v51, %v1192_v31  ;;  %v1241_v41 = vmul.f32 %v1805_v7, %v1237_v33 }
 0x169   : > { %v1821_v43 = vpop.eup %1820  ;;  %v2299_v44 = vadd.f32 %v2213_v57, %v1027_v35  ;;  %v1039_v45 = vmul.f32 %v1819_v37, %v1035_v29  ;;  %1052 = vst [vmem:[%s2269_s21 + $0x18] sm:$0xff] %v2292_v36  ;;  %1832 = vpow2.f32 %v1632_v54  ;;  %v1636_v56 = vmul.f32 -1.442695, %v2292_v36 }
 0x16a   : > { %v1823_v47 = vpop.eup %1822  ;;  %v1187_v48 = vmul.f32 %v1819_v37, %v1819_v37  ;;  %v1191_v52 = vmul.f32 %v1183_v38, %v1183_v38  ;;  %v1236_v60 = vmul.f32 %v1817_v34, %v1232_v40  ;;  %v1240_v62 = vadd.f32 %v2248_v51, %v1196_v39 }
 0x16b   : > { %v2306_v0 = vadd.f32 %v2219_v59, %v1039_v45  ;;  %1047 = vst [vmem:[%s2259_s30 + $0x10] sm:$0xff] %v2299_v44  ;;  %v1631_v57 = vmul.f32 -1.442695, %v2299_v44  ;;  %1834 = vpow2.f32 %v1636_v56  ;;  %v1245_v1 = vadd.f32 %v1241_v41, %v1233_v32 }
 0x16c   : > { %v1825_v63 = vpop.eup %1824  ;;  %v1195_v58 = vmul.f32 %v1187_v48, %v1187_v48  ;;  %v1231_v61 = vadd.f32 %v2252_v55, %v1191_v52  ;;  %v1244_v3 = vmul.f32 %v1813_v25, %v1240_v62  ;;  %v1246_v5 = vadd.f32 %v1242_v24, %v1234_v14 }
 0x16d   : > { %v1066_v42 = vadd.f32 1.0, %v1825_v63  ;;  %v1827_v4 = vpop.eup %1826  ;;  %1051 = vst [vmem:[%s2269_s21 + $0x10] sm:$0xff] %v2306_v0  ;;  %1836 = vpow2.f32 %v1631_v57  ;;  %v1635_v51 = vmul.f32 -1.442695, %v2306_v0  ;;  %v1249_v25 = vmul.f32 0.5, %v1245_v1 }
 0x16e   : > { %v1090_v59 = vadd.f32 1.0, %v1827_v4  ;;  %v1235_v6 = vmul.f32 %v1823_v47, %v1231_v61  ;;  %v1239_v7 = vadd.f32 %v2252_v55, %v1195_v58  ;;  %v1248_v9 = vadd.f32 %v1244_v3, %v1236_v60 }
 0x16f   : > { %1838 = vrcp.f32 %v1066_v42  ;;  %v1829_v46 = vpop.eup %1828  ;;  %v1250_v27 = vmul.f32 0.5, %v1246_v5  ;;  %v1637_v29 = vadd.f32 -1.0, %v1249_v25 }
 0x170   : > { %1840 = vpow2.f32 %v1635_v51  ;;  %v1065_v10 = vadd.f32 1.0, %v1829_v46  ;;  %v1243_v11 = vmul.f32 %v1821_v43, %v1239_v7  ;;  %v1252_v31 = vmul.f32 0.5, %v1248_v9 }
 0x171   : > { %1842 = vrcp.f32 %v1090_v59  ;;  %v1831_v12 = vpop.eup %1830  ;;  %v1638_v33 = vadd.f32 -1.0, %v1250_v27  ;;  %v2331_v37 = vmul.f32 3.8146973e-06, %v1637_v29 }
 0x172   : > { %1844 = vrcp.f32 %v1065_v10  ;;  %v1089_v13 = vadd.f32 1.0, %v1831_v12  ;;  %v1247_v15 = vadd.f32 %v1243_v11, %v1235_v6  ;;  %v2336_v43 = vadd.f32 -1.0, %v1252_v31 }
 0x173   : > { %v1833_v50 = vpop.eup %1832  ;;  %v2341_v48 = vmul.f32 3.8146973e-06, %v1638_v33 }
 0x174   : > { %v1068_v16 = vadd.f32 1.0, %v1833_v50  ;;  %1846 = vrcp.f32 %v1089_v13  ;;  %v2339_v47 = vmul.f32 0.5, %v1247_v15 }
 0x175   : > { %v1835_v18 = vpop.eup %1834 }
 0x176   : > { %1848 = vrcp.f32 %v1068_v16  ;;  %v1092_v14 = vadd.f32 1.0, %v1835_v18 }
 0x177   : > { %v1837_v19 = vpop.eup %1836 }
 0x178   : > { %v1067_v55 = vadd.f32 1.0, %v1837_v19  ;;  %1850 = vrcp.f32 %v1092_v14 }
 0x179   : > { %v2316_v20 = vpop.eup %1838 }
 0x17a   : > { %v1841_v21 = vpop.eup %1840  ;;  %1852 = vlog2.f32 %v2316_v20 }
 0x17b   : > { %v1843_v22 = vpop.eup %1842  ;;  %1854 = vrcp.f32 %v1067_v55  ;;  %v1091_v23 = vadd.f32 1.0, %v1841_v21 }
 0x17c   : > { %1856 = vlog2.f32 %v1843_v22  ;;  %v2319_v24 = vpop.eup %1844  ;;  %v1126_v56 = vsub.f32 1.0, %v1843_v22 }
 0x17d   : > { %1858 = vrcp.f32 %v1091_v23  ;;  %v1157_v42 = vsub.f32 1.0, %v2319_v24 }
 0x17e   : > { %1860 = vlog2.f32 %v2319_v24  ;;  %v1847_v53 = vpop.eup %1846 }
 0x17f   : > { %1862 = vlog2.f32 %v1847_v53  ;;  %v1125_v1 = vsub.f32 1.0, %v1847_v53 }
 0x180   : > { %v2322_v28 = vpop.eup %1848 }
 0x181   : > { %1864 = vlog2.f32 %v2322_v28  ;;  %v1160_v7 = vsub.f32 1.0, %v2322_v28 }
 0x182   : > { %v2325_v30 = vpop.eup %1850 }
 0x183   : > { %1866 = vlog2.f32 %v2325_v30  ;;  %v1128_v59 = vsub.f32 1.0, %v2325_v30 }
 0x184   : > { %v1853_v32 = vpop.eup %1852 }
 0x185   : > { %v2328_v34 = vpop.eup %1854  ;;  %v1104_v35 = vmul.f32 0.6931472, %v1853_v32 }
 0x186   : > { %v1857_v54 = vpop.eup %1856  ;;  %1868 = vlog2.f32 %v2328_v34 }
 0x187   : > { %v2333_v38 = vpop.eup %1858  ;;  %v1112_v39 = vmul.f32 0.6931472, %v1857_v54  ;;  %v1118_v40 = vmax.f32 %v1104_v35, -100.0  ;;  %v1130_v41 = vsub.f32 %v1104_v35, %v2244_v49  ;;  %v1158_v49 = vsub.f32 1.0, %v2316_v20 }
 0x188   : > { %v1861_v45 = vpop.eup %1860  ;;  %1870 = vlog2.f32 %v2333_v38 }
 0x189   : > { %v1102_v52 = vmul.f32 0.6931472, %v1861_v45  ;;  %v1122_v60 = vmul.f32 %v1843_v22, %v1118_v40  ;;  %v1134_v62 = vmax.f32 %v1130_v41, -100.0  ;;  %v1150_v63 = vmax.f32 %v1112_v39, -100.0  ;;  %v1863_v57 = vpop.eup %1862 }
 0x18a   : > { %v1162_v58 = vsub.f32 %v1112_v39, %v2256_v2  ;;  %v1110_v61 = vmul.f32 0.6931472, %v1863_v57  ;;  %v1127_v2 = vsub.f32 1.0, %v2333_v38 }
 0x18b   : > { %v1117_v3 = vmax.f32 %v1102_v52, -100.0  ;;  %v1129_v4 = vsub.f32 %v1102_v52, %v2266_v8  ;;  %v1138_v51 = vmul.f32 %v1134_v62, %v1126_v56  ;;  %v1865_v5 = vpop.eup %1864  ;;  %v1154_v6 = vmul.f32 %v2316_v20, %v1150_v63 }
 0x18c   : > { %v1166_v46 = vmax.f32 %v1162_v58, -100.0  ;;  %v1108_v9 = vmul.f32 0.6931472, %v1865_v5  ;;  %v1149_v15 = vmax.f32 %v1110_v61, -100.0  ;;  %v1161_v50 = vsub.f32 %v1110_v61, %v2276_v17 }
 0x18d   : > { %v1121_v10 = vmul.f32 %v1847_v53, %v1117_v3  ;;  %v1133_v11 = vmax.f32 %v1129_v4, -100.0  ;;  %v1142_v12 = vadd.f32 %v1138_v51, %v1122_v60  ;;  %v1867_v13 = vpop.eup %1866  ;;  %v1159_v58 = vsub.f32 1.0, %v2328_v34 }
 0x18e   : > { %v1170_v8 = vmul.f32 %v1166_v46, %v1158_v49  ;;  %v1116_v16 = vmul.f32 0.6931472, %v1867_v13  ;;  %v1120_v18 = vmax.f32 %v1108_v9, -100.0  ;;  %v1132_v14 = vsub.f32 %v1108_v9, %v2284_v26 }
 0x18f   : > { %v1137_v19 = vmul.f32 %v1133_v11, %v1125_v1  ;;  %v1146_v55 = vsub.f32 0.0, %v1142_v12  ;;  %v1153_v21 = vmul.f32 %v2319_v24, %v1149_v15  ;;  %v1165_v22 = vmax.f32 %v1161_v50, -100.0 }
 0x190   : > { %v1869_v20 = vpop.eup %1868  ;;  %v1174_v23 = vadd.f32 %v1170_v8, %v1154_v6  ;;  %v1124_v53 = vmul.f32 %v2325_v30, %v1120_v18  ;;  %v1136_v27 = vmax.f32 %v1132_v14, -100.0  ;;  %v1152_v32 = vmax.f32 %v1116_v16, -100.0 }
 0x191   : > { %v1106_v25 = vmul.f32 0.6931472, %v1869_v20  ;;  %v1141_v29 = vadd.f32 %v1137_v19, %v1121_v10  ;;  %v1164_v17 = vsub.f32 %v1116_v16, %v2292_v36  ;;  %v1169_v33 = vmul.f32 %v1165_v22, %v1157_v42  ;;  %v1337_v19 = vld [vmem:[%s2259_s30] sm:$0xff] (%p2036_p6)  ;;  %v1339_v20 = vld [vmem:[%s2259_s30 + $0x8] sm:$0xff] (%p2036_p6) }
 0x192   : > { %v1871_v31 = vpop.eup %1870  ;;  %v1178_v35 = vsub.f32 %v1146_v55, %v1174_v23  ;;  %v1140_v40 = vmul.f32 %v1136_v27, %v1128_v59  ;;  %v1156_v24 = vmul.f32 %v2322_v28, %v1152_v32  ;;  %v1264_v6 = vmul.f32 3.8146973e-06, %v2336_v43  ;;  %v1341_v55 = vld [vmem:[%s2259_s30 + $0x10] sm:$0xff] (%p2036_p6)  ;;  %1338 = vst [vmem:[%s1303_s13] sm:$0xff] (%p2036_p6), %v1337_v19  ;;  %1340 = vst [vmem:[%s1303_s13 + $0x10] sm:$0xff] (%p2036_p6), %v1339_v20 }
 0x193   : > { %v1114_v54 = vmul.f32 0.6931472, %v1871_v31  ;;  %v1119_v26 = vmax.f32 %v1106_v25, -100.0  ;;  %v1131_v39 = vsub.f32 %v1106_v25, %v2299_v44  ;;  %v1145_v41 = vsub.f32 0.0, %v1141_v29  ;;  %1342 = vst [vmem:[%s1303_s13 + $0x20] sm:$0xff] (%p2036_p6), %v1341_v55 }
 0x194   : > { %v1168_v45 = vmax.f32 %v1164_v17, -100.0  ;;  %v1173_v56 = vadd.f32 %v1169_v33, %v1153_v21  ;;  %v1144_v60 = vadd.f32 %v1140_v40, %v1124_v53  ;;  %v1258_v1 = vmul.f32 2.3841858e-07, %v1178_v35  ;;  %v1343_v21 = vld [vmem:[%s2259_s30 + $0x18] sm:$0xff] (%p2036_p6) }
 0x195   : > { %v1123_v30 = vmul.f32 %v2333_v38, %v1119_v26  ;;  %v1135_v52 = vmax.f32 %v1131_v39, -100.0  ;;  %v1151_v62 = vmax.f32 %v1114_v54, -100.0  ;;  %v1163_v63 = vsub.f32 %v1114_v54, %v2306_v0  ;;  %1344 = vst [vmem:[%s1303_s13 + $0x30] sm:$0xff] (%p2036_p6), %v1343_v21 }
 0x196   : > { %v1172_v36 = vmul.f32 %v1168_v45, %v1160_v7  ;;  %v1177_v57 = vsub.f32 %v1145_v41, %v1173_v56  ;;  %v1148_v49 = vsub.f32 0.0, %v1144_v60  ;;  %v1266_v4 = vsub.f32 %v1258_v1, %v2341_v48 }
 0x197   : > { %v1139_v42 = vmul.f32 %v1135_v52, %v1127_v2  ;;  %v1155_v44 = vmul.f32 %v2328_v34, %v1151_v62  ;;  %v1167_v61 = vmax.f32 %v1163_v63, -100.0  ;;  %v1639_v46 = vadd.f32 -1.0, %v2339_v47 }
 0x198   : > { %v1176_v28 = vadd.f32 %v1172_v36, %v1156_v24  ;;  %v1257_v3 = vmul.f32 2.3841858e-07, %v1177_v57 }
 0x199   : > { %v1143_v38 = vadd.f32 %v1139_v42, %v1123_v30  ;;  %v1171_v51 = vmul.f32 %v1167_v61, %v1159_v58  ;;  %v1263_v13 = vmul.f32 3.8146973e-06, %v1639_v46 }
 0x19a   : > { %v1180_v5 = vsub.f32 %v1148_v49, %v1176_v28  ;;  %v1265_v59 = vsub.f32 %v1257_v3, %v2331_v37 }
 0x19b   : > { %v1147_v0 = vsub.f32 0.0, %v1143_v38  ;;  %v1175_v7 = vadd.f32 %v1171_v51, %v1155_v44 }
 0x19c   : > { %v1260_v9 = vmul.f32 2.3841858e-07, %v1180_v5  ;;  %v1269_v10 = vadd.f32 %v1266_v4, %v1265_v59 }
 0x19d   : > { %v1179_v11 = vsub.f32 %v1147_v0, %v1175_v7 }
 0x19e   : > { %v1268_v34 = vsub.f32 %v1260_v9, %v1264_v6 }
 0x19f   : > { %v1259_v12 = vmul.f32 2.3841858e-07, %v1179_v11 }
 0x1a1   : > { %v1267_v48 = vsub.f32 %v1259_v12, %v1263_v13 }
 0x1a3   : > { %v1270_v2 = vadd.f32 %v1269_v10, %v1267_v48 }
 0x1a5   : > { %v1271_v15 = vadd.f32 %v1270_v2, %v1268_v34 }
 0x1a7   : > { %1272 = vadd.xlane.f32.xlu0 %v1271_v15 }
 0x234   : > { %v1273_v50 = vpop.xlane.xlu0 %1272 }
 0x235   : > { %v1274_v37 = vrot.slane %v1273_v50, 4 }
 0x237   : > { %v1275_v8 = vadd.f32 %v1274_v37, %v1273_v50 }
 0x239   : > { %v1276_v16 = vrot.slane %v1275_v8, 2 }
 0x23b   : > { %v1277_v43 = vadd.f32 %v1276_v16, %v1275_v8 }
 0x23d   : > { %v1278_v18 = vrot.slane %v1277_v43, 1 }
 0x23f   : > { %v1279_v14 = vadd.f32 %v1278_v18, %v1277_v43 }
 0x241   : > { %1695 = vpush %v1279_v14 }
 0x26e   : > { %1299 = sbr.rel (!%p2036_p6) target bundleno = 629 (0x275), region = 132 }
 0x272   : > { %s1696_s17 = spop %1695 }
 0x273   : > { %v1281_v47 = vstv %s1696_s17 }
 0x274   : > { %1282 = vst [vmem:[%s576_s2] sm:$0xff] %v1281_v47 }
 0x275 PF: > { %1350 = sbr.rel (!%p2036_p6) target bundleno = 636 (0x27c), region = 170  ;;  %s1645_s28 = sshll.u32 (%p2036_p6), %s1914_s16, 3  ;;  %v1388_v22 = vld [vmem:[%s2269_s21] sm:$0xff] (%p2036_p6)  ;;  %v1390_v23 = vld [vmem:[%s2269_s21 + $0x8] sm:$0xff] (%p2036_p6)  ;;  %v1392_v25 = vld [vmem:[%s2269_s21 + $0x10] sm:$0xff] (%p2036_p6) }
 0x276   : > { %s1352_s30 = sadd.s32 (%p2036_p6), %s1910_s15, %s1645_s28  ;;  %v1394_v53 = vld [vmem:[%s2269_s21 + $0x18] sm:$0xff] (%p2036_p6) }
 0x277   : > { %s1646_s20 = sshll.u32 (%p2036_p6), %s1352_s30, 3 }
 0x278   : > { %s1354_s3 = scalar_lea.vmem (%p2036_p6), %s2423_s9, %s1646_s20 }
 0x279   : > { %1389 = vst [vmem:[%s1354_s3] sm:$0xff] (%p2036_p6), %v1388_v22  ;;  %1391 = vst [vmem:[%s1354_s3 + $0x10] sm:$0xff] (%p2036_p6), %v1390_v23 }
 0x27a   : > { %1393 = vst [vmem:[%s1354_s3 + $0x20] sm:$0xff] (%p2036_p6), %v1392_v25  ;;  %1395 = vst [vmem:[%s1354_s3 + $0x30] sm:$0xff] (%p2036_p6), %v1394_v53 }
 0x27c PF: > { %s21_s19 = sadd.s32 1, %s1926_s19   ;;  %s2439_s15 = sld [smem:[#allocation6_spill]] }
 0x27d   : > { %p18_p1 = scmp.ge.s32.totalorder %s21_s19, 6   ;;  %s2440_s16 = sld [smem:[#allocation7_spill]] }
 0x27e   : > { %s2441_s17 = sld [smem:[#allocation8_spill]]  ;;  %s2442_s18 = sld [smem:[#allocation9_spill]] }
 0x27f   : > { %s2443_s13 = smov %s1906_s14  ;;  %s2444_s14 = smov %s2044_s29 }
 0x280   :  { %20 = sbr.rel (!%p18_p1) target bundleno = 7 (0x7), region = 277 }

</bundles_post_ra>
